<compile_context>
chip_gen: v7x
topology: tpu7x:2x2x1
jax: 0.10.0
libtpu: 0.0.40
codegen_flags: <defaults>
</compile_context>

<pallas_src>
import functools

import jax
import jax.numpy as jnp
from jax.experimental import pallas as pl
from jax.experimental.pallas import tpu as pltpu


NEG_SLOPE = 0.01                      # nn.LeakyReLU default
BN_EPS = 1e-5                         # nn.BatchNorm1d default
WEIGHT_DTYPE = jnp.float32            # jnp.bfloat16 halves weight-streaming bytes
MAX_PANEL_BYTES = 8 * 1024 * 1024     # per weight buffer (x2 when double-buffered)
VMEM_LIMIT_BYTES = 32 * 1024 * 1024   # covers the largest layer on v5e/v6e/v7x


# ----------------------------------------------------------------------------
# Fused kernel: out[:, panel] = leaky_relu( x @ W[:, panel] + b[panel] )
# Grid: (N // tn,) -- one output column panel per grid step, full K per panel.
# ----------------------------------------------------------------------------
def _linear_act_kernel(x_ref, w_ref, b_ref, o_ref, *, apply_act):
    x = x_ref[...].astype(w_ref.dtype)
    y = jnp.dot(x, w_ref[...], preferred_element_type=jnp.float32)
    y = y + b_ref[...].astype(jnp.float32)
    if apply_act:
        y = jnp.where(y >= 0, y, NEG_SLOPE * y)
    o_ref[...] = y.astype(o_ref.dtype)


def _choose_tn(K, N, itemsize):
    """Pick the output-panel width.

    Largest 128-multiple divisor of N whose full-K weight panel stays under
    MAX_PANEL_BYTES, preferring >= 2 panels per layer so megacore can split the
    weight streaming.  Falls back to the full dim when N is not 128-aligned.
    """
    if N % 128 != 0:
        return N                       # full-dim block (correct, unaligned case)
    if N == 128:
        return 128
    tn = N // 2                        # >= 2 panels when possible (megacore)
    while tn > 128 and (N % tn != 0 or tn % 128 != 0
                        or K * tn * itemsize > MAX_PANEL_BYTES):
        tn //= 2
    return max(tn, 128)


def linear_act(x, w, b, *, apply_act):
    """x: (B, K) f32; w: (K, N) (BN already folded in); b: (1, N). Returns (B, N) f32."""
    B, K = x.shape
    Kw, N = w.shape
    assert K == Kw
    tn = _choose_tn(K, N, jnp.dtype(w.dtype).itemsize)
    assert N % tn == 0
    grid = (N // tn,)

    kernel = functools.partial(_linear_act_kernel, apply_act=apply_act)

    return pl.pallas_call(
        kernel,
        out_shape=jax.ShapeDtypeStruct((B, N), jnp.float32),
        grid_spec=pltpu.PrefetchScalarGridSpec(
            num_scalar_prefetch=0,
            grid=grid,
            in_specs=[
                pl.BlockSpec((B, K), lambda j: (0, 0)),    # x: full row block (grid-invariant)
                pl.BlockSpec((K, tn), lambda j: (0, j)),   # W: full-K column panel
                pl.BlockSpec((1, tn), lambda j: (0, j)),   # folded bias
            ],
            out_specs=pl.BlockSpec((B, tn), lambda j: (0, j)),
        ),
        compiler_params=pltpu.CompilerParams(
            dimension_semantics=("parallel",),
            vmem_limit_bytes=VMEM_LIMIT_BYTES),
    )(x, w, b)


# ----------------------------------------------------------------------------
# Parameter construction (deterministic, PyTorch-like init; BN folded into W/b)
# ----------------------------------------------------------------------------
def make_params(key, hidden_dim, output_dim):
    dims = [hidden_dim, 256, 512, 1024, 2048, 4096, output_dim]
    params = []
    for i in range(6):
        fan_in, fan_out = dims[i], dims[i + 1]
        key, kw, kb, kg, kbe, km, kv = jax.random.split(key, 7)
        bound = 1.0 / jnp.sqrt(fan_in)
        w = jax.random.uniform(kw, (fan_in, fan_out), jnp.float32, -bound, bound)
        b = jax.random.uniform(kb, (1, fan_out), jnp.float32, -bound, bound)
        if i < 5:
            gamma = 1.0 + 0.1 * jax.random.normal(kg, (1, fan_out), jnp.float32)
            beta = 0.1 * jax.random.normal(kbe, (1, fan_out), jnp.float32)
            rmean = 0.1 * jax.random.normal(km, (1, fan_out), jnp.float32)
            rvar = 1.0 + 0.1 * jax.random.uniform(kv, (1, fan_out), jnp.float32)
            # Fold eval-mode BN into the linear layer:
            #   BN(xW + b) = xW*scale + (b*scale + beta - rmean*scale)
            scale = gamma / jnp.sqrt(rvar + BN_EPS)        # (1, fan_out)
            w = w * scale
            b = b * scale + (beta - rmean * scale)
        params.append(dict(w=w.astype(WEIGHT_DTYPE), b=b.astype(jnp.float32)))
    return params


def decoder_forward(x, params):
    for i, p in enumerate(params):
        x = linear_act(x, p["w"], p["b"], apply_act=(i < 5))
    return x


def decoder_reference(x, params):
    for i, p in enumerate(params):
        y = x @ p["w"].astype(jnp.float32) + p["b"]
        if i < 5:
            y = jnp.where(y >= 0, y, NEG_SLOPE * y)
        x = y
    return x


if __name__ == "__main__":
    hidden_dim = 32
    output_dim = 128
    batch = 8

    key = jax.random.PRNGKey(0)
    key, kx = jax.random.split(key)
    x = jax.random.normal(kx, (batch, hidden_dim), jnp.float32)

    params = make_params(key, hidden_dim, output_dim)

    out = decoder_forward(x, params)
    out = jax.block_until_ready(out)

    ref = decoder_reference(x, params)
    assert out.shape == (batch, output_dim)
    assert jnp.allclose(out, ref, atol=1e-3, rtol=1e-3), "mismatch vs reference"

    print("KERNEL_OK")
</pallas_src>

<mosaic_0001>
module attributes {stable_mosaic.version = 11 : i64} {
  func.func @_linear_act_kernel(%arg0: i32, %arg1: memref<8x32xf32, #tpu.memory_space<vmem>>, %arg2: memref<32x128xf32, #tpu.memory_space<vmem>>, %arg3: memref<1x128xf32, #tpu.memory_space<vmem>>, %arg4: memref<8x128xf32, #tpu.memory_space<vmem>>) attributes {dimension_semantics = [#tpu.dimension_semantics<parallel>], iteration_bounds = array<i64: 2>, scalar_prefetch = 0 : i64, scratch_operands = 0 : i64, tpu.core_type = #tpu.core_type<tc>, window_params = [{pipeline_mode = #tpu.pipeline_mode<synchronous>, transform_indices = @transform_0, window_bounds = array<i64: 8, 32>}, {transform_indices = @transform_1, window_bounds = array<i64: 32, 128>}, {transform_indices = @transform_2, window_bounds = array<i64: 1, 128>}, {transform_indices = @transform_3, window_bounds = array<i64: 8, 128>}]} {
    %c0 = arith.constant 0 : index
    %c0_0 = arith.constant 0 : index
    %0 = vector.load %arg1[%c0, %c0_0] : memref<8x32xf32, #tpu.memory_space<vmem>>, vector<8x32xf32>
    %c0_1 = arith.constant 0 : index
    %c0_2 = arith.constant 0 : index
    %1 = vector.load %arg2[%c0_1, %c0_2] : memref<32x128xf32, #tpu.memory_space<vmem>>, vector<32x128xf32>
    %cst = arith.constant dense<0.000000e+00> : vector<8x128xf32>
    %2 = tpu.matmul %0, %1, %cst {dimension_numbers = #tpu.dot_dimension_numbers<[1], [0], [0], [1], [0, 0, 1, 1], [], []>} : vector<8x32xf32>, vector<32x128xf32>, vector<8x128xf32> -> vector<8x128xf32>
    %c0_3 = arith.constant 0 : index
    %c0_4 = arith.constant 0 : index
    %3 = vector.load %arg3[%c0_3, %c0_4] : memref<1x128xf32, #tpu.memory_space<vmem>>, vector<1x128xf32>
    %4 = vector.broadcast %3 : vector<1x128xf32> to vector<8x128xf32>
    %5 = arith.addf %2, %4 : vector<8x128xf32>
    %cst_5 = arith.constant 0.000000e+00 : f32
    %6 = vector.broadcast %cst_5 : f32 to vector<8x128xf32>
    %7 = arith.cmpf oge, %5, %6 : vector<8x128xf32>
    %cst_6 = arith.constant 0.00999999977 : f32
    %8 = vector.broadcast %cst_6 : f32 to vector<8x128xf32>
    %9 = arith.mulf %8, %5 : vector<8x128xf32>
    %10 = arith.select %7, %5, %9 : vector<8x128xi1>, vector<8x128xf32>
    %c0_7 = arith.constant 0 : index
    %c0_8 = arith.constant 0 : index
    %11 = vector.load %arg4[%c0_7, %c0_8] : memref<8x128xf32, #tpu.memory_space<vmem>>, vector<8x128xf32>
    tpu.vector_store %arg4[%c0_7, %c0_8], %10 {strides = array<i32>} : memref<8x128xf32, #tpu.memory_space<vmem>>, vector<8x128xf32>,
    return
  }
  func.func @transform_0(%arg0: i32) -> (i32, i32) {
    %c0_i32 = arith.constant 0 : i32
    %c0_i32_0 = arith.constant 0 : i32
    %c0_i32_1 = arith.constant 0 : i32
    return %c0_i32, %c0_i32_0 : i32, i32
  }
  func.func @transform_1(%arg0: i32) -> (i32, i32) {
    %c0_i32 = arith.constant 0 : i32
    %c0_i32_0 = arith.constant 0 : i32
    return %c0_i32, %arg0 : i32, i32
  }
  func.func @transform_2(%arg0: i32) -> (i32, i32) {
    %c0_i32 = arith.constant 0 : i32
    %c0_i32_0 = arith.constant 0 : i32
    return %c0_i32, %arg0 : i32, i32
  }
  func.func @transform_3(%arg0: i32) -> (i32, i32) {
    %c0_i32 = arith.constant 0 : i32
    %c0_i32_0 = arith.constant 0 : i32
    return %c0_i32, %arg0 : i32, i32
  }
}

</mosaic_0001>

<bundles_post_ra>
// kernel: tpu_custom_call.1
= control target key start
LH: loop header
LB: loop body
LE: loop exit
PB: predicated region body
PF: predicated region fallthrough
CT: control target
= control target key end

     0   :  { %8 = vsyncpa [#allocation3], 0  ;;  %s872_s0 = inlined_call_operand.hbm [shape: f32[8,32], index: 0, kind: input, shape index: {}]   ;;  %s873_s1 = inlined_call_operand.hbm [shape: f32[32,256], index: 1, kind: input, shape index: {}]   ;;  %s874_s2 = inlined_call_operand.vmem [shape: f32[1,256], index: 2, kind: input, shape index: {}]   ;;  %s875_s3 = inlined_call_operand.hbm [shape: f32[8,256], index: 3, kind: output, shape index: {}]  }
   0x1   :  { %9 = vsyncpa [#allocation6], 0 }
   0x2   :  { %11 = vsyncpa [#allocation6 + $0x1], 0 }
   0x3   :  { %12 = vsyncpa [#allocation4], 0 }
   0x4   :  { %14 = vsyncpa [#allocation4 + $0x1], 0  ;;  %s670_s12 = smov 0   ;;  %s672_s13 = smov 0  }
   0x5   :  { %s674_s14 = smov 0   ;;  %s676_s15 = smov 0  }
   0x6 LB: > { %s691_s16 = sadd.s32 4294967295, %s639_s15   ;;  %s410_s17 = sadd.s32 4294967294, %s639_s15   ;;  %s639_s15 = sphi %s676_s15, %s900_s15   ;;  %s635_s14 = sphi %s674_s14, %s899_s14   ;;  %s631_s13 = sphi %s672_s13, %s898_s13   ;;  %s627_s12 = sphi %s670_s12, %s897_s12  }
   0x7   : > { %s695_s18 = sadd.s32 1, %s639_s15   ;;  %s48_s19 = sadd.s32 1, %s635_s14 }
   0x8   : > { %s45_s20 = ssub.s32 %s639_s15, %s695_s18  ;;  %p55_p0 = scmp.ne.s32.totalorder %s635_s14, %s631_s13 }
   0x9   : > { %p46_p1 = scmp.eq.s32.totalorder %s45_s20, 0  ;;  %p56_p2 = scmp.eq.s32.totalorder %s639_s15, 0 }
   0xa   : > { %p61_p3 = scmp.ne.s32.totalorder %s631_s13, %s627_s12  ;;  %p876_p4 = scmp.eq.s32.totalorder %s691_s16, 0 }
   0xb   : > { %s707_s21 = scalar_select %p46_p1, %s635_s14, %s48_s19  }
   0xc   : > { %p709_p5 = por %p56_p2, %p55_p0  ;;  %p715_p6 = por %p876_p4, %p61_p3 }
   0xd   : > { %p111_p7 = scmp.eq.s32.totalorder %s691_s16, 1  ;;  %p117_p8 = scmp.eq.s32.totalorder %s410_s17, 1 }
   0xe   : > { %s882_s23 = scalar_select %p715_p6, 1, 0 }
   0xf   : > { %p411_p9 = scmp.ge.s32.totalorder %s639_s15, 1  ;;  %p124_p10 = scmp.lt.s32.totalorder %s639_s15, 3 }
  0x10   : > { %p722_p11 = por %p111_p7, %p55_p0  ;;  %p726_p12 = por %p117_p8, %p61_p3 }
  0x11   : > { %p730_p13 = pnand %p411_p9, %p124_p10  ;;  %s641_s27 = smov [#allocation2]  }
  0x12   : > { %s883_s24 = scalar_select %p722_p11, 1, 0 }
  0x13   : > { %s884_s25 = scalar_select %p726_p12, 1, 0 }
  0x14   : > { %s885_s26 = scalar_select %p730_p13, 1, 0 }
  0x15   : > { %p456_p2 = pneg %p730_p13  ;;  %s137_s28 = sshll.u32 %s641_s27, 4  ;;  %s138_s28 = int_to_ptr.vmem [resolvable:$true] %s137_s28 }
  0x16   : > { %p469_p4 = scmp.lt.s32.totalorder %s639_s15, 2  ;;  %p886_p0 = scmp.eq.s32.totalorder %s691_s16, 0 }
  0x17   : > { %s148_s30 = sand.u32 1, %s635_s14   ;;  %s511_s8 = scalar_lea.hbm %s872_s0, 128 }
  0x18   : > { %p740_p7 = pnand %p456_p2, %p886_p0  ;;  %p747_p3 = pnand %p469_p4, %p709_p5 }
  0x19   : > { %s414_s5 = sshll.u32 %s148_s30, 5  ;;  %p512_p8 = scmp.ne.s32.totalorder %s872_s0, %s511_s8 }
  0x1a   : > { %s888_s4 = scalar_select %p747_p3, 1, 0 }
  0x1b   : > { %p513_p9 = pneg %p740_p7  ;;  %p518_p4 = scmp.lt.u32.totalorder %s511_s8, %s872_s0 }
  0x1d   : > { %p514_p10 = pnand %p513_p9, %p512_p8 }
  0x1f   : > { %p515_p2 = pneg %p514_p10 }
  0x21   : > { %p520_p5 = pnand %p518_p4, %p515_p2 }
  0x23   : > { %523 = shalt.err (!%p520_p5)
}
  0x24   : > { %s524_s19 = scalar_lea.vmem %s138_s28, 128  ;;  %p532_p11 = scmp.lt.s32.totalorder %s138_s28, %s138_s28 }
  0x25   : > { %p525_p0 = scmp.ne.s32.totalorder %s138_s28, %s524_s19  ;;  %p533_p6 = scmp.lt.s32.totalorder %s524_s19, %s524_s19 }
  0x27   : > { %p527_p1 = pnand %p525_p0, %p513_p9  ;;  %p534_p13 = por %p533_p6, %p532_p11 }
  0x29   : > { %p528_p12 = pneg %p527_p1 }
  0x2b   : > { %p535_p3 = pnand %p534_p13, %p528_p12 }
  0x2d   : > { %538 = shalt.err (!%p535_p3)
}
  0x2e   : > { %459 = dma.hbm_to_vmem [thread:$0]  (!%p740_p7), %s872_s0, 128, %s138_s28, [#allocation3]  }
  0x2f   : > { %s415_s27 = sshll.u32 %s639_s15, 7  ;;  %s152_s6 = scalar_lea.vmem [#allocation5], %s414_s5 }
  0x30   : > { %s158_s7 = sshll.u32 %s152_s6, 4  ;;  %s771_s10 = scalar_lea.hbm %s873_s1, %s415_s27  ;;  %s773_s7 = int_to_ptr.vmem [resolvable:$true] %s158_s7 }
  0x31   : > { %s775_s29 = scalar_lea.sflag [#allocation6], %s148_s30  ;;  %s539_s11 = scalar_lea.hbm %s771_s10, 512 }
  0x32   : > { %p540_p6 = scmp.ne.s32.totalorder %s771_s10, %s539_s11  ;;  %p889_p11 = scmp.ne.s32.totalorder %s888_s4, 0 }
  0x33   : > { %s544_s17 = scalar_lea.hbm %s873_s1, 1024  ;;  %p545_p7 = scmp.lt.u32.totalorder %s771_s10, %s873_s1 }
  0x34   : > { %p541_p12 = pneg %p889_p11  ;;  %p546_p3 = scmp.lt.u32.totalorder %s544_s17, %s539_s11 }
  0x35   : > { %p548_p9 = scmp.lt.u32.totalorder %s539_s11, %s771_s10 }
  0x36   : > { %p542_p13 = pnand %p541_p12, %p540_p6  ;;  %p547_p8 = por %p546_p3, %p545_p7 }
  0x38   : > { %p543_p1 = pneg %p542_p13  ;;  %p549_p10 = por %p548_p9, %p547_p8 }
  0x3a   : > { %p550_p2 = pnand %p549_p10, %p543_p1 }
  0x3c   : > { %553 = shalt.err (!%p550_p2)
}
  0x3d   : > { %s554_s30 = scalar_lea.vmem %s773_s7, 512  ;;  %s642_s22 = smov [#allocation5]  }
  0x3e   : > { %p555_p4 = scmp.ne.s32.totalorder %s773_s7, %s554_s30  ;;  %s559_s27 = sshll.u32 %s642_s22, 4  ;;  %s560_s27 = int_to_ptr.vmem [resolvable:$false] %s559_s27 }
  0x3f   : > { %s561_s6 = scalar_lea.vmem %s560_s27, 1024  ;;  %p562_p6 = scmp.lt.s32.totalorder %s773_s7, %s560_s27 }
  0x40   : > { %p557_p5 = pnand %p555_p4, %p541_p12  ;;  %p563_p13 = scmp.lt.s32.totalorder %s561_s6, %s554_s30 }
  0x42   : > { %p558_p0 = pneg %p557_p5  ;;  %p564_p7 = por %p563_p13, %p562_p6 }
  0x44   : > { %p565_p3 = pnand %p564_p7, %p558_p0 }
  0x46   : > { %568 = shalt.err (!%p565_p3)
}
  0x47   : > { %s643_s8 = smov 256   ;;  %s644_s9 = smov 128  }
  0x48   : > { %s645_s11 = smov 8   ;;  %p890_p12 = scmp.ne.s32.totalorder %s885_s26, 0 }
  0x49   : > { %463 = dma.hbm_to_vmem [thread:$0]  (!%p889_p11), %s771_s10, 512, %s773_s7, %s775_s29, %s643_s8, %s644_s9, %s645_s11  }
  0x4a   : > { %176 = sbr.rel (%p890_p12) target bundleno = 327 (0x147), region = 32  ;;  %p891_p1 = scmp.eq.s32.totalorder (!%p890_p12), %s691_s16, 0 }
  0x51   : > { %614 = dma.done.wait (%p891_p1), [#allocation3], 128   ;;  %p892_p8 = pmov %p891_p1 }
  0x52   : > { %s810_s28 = sand.u32 1, %s631_s13   ;;  %p893_p9 = scmp.ne.s32.totalorder %s882_s23, 0 }
  0x53   : > { %616 = vsyncadd (%p892_p8), [#allocation3], 4294967168  ;;  %s418_s5 = sshll.u32 %s810_s28, 5  ;;  %s183_s17 = scalar_lea.sflag [#allocation6], %s810_s28 }
  0x54   : > { %s186_s19 = scalar_lea.vmem [#allocation5], %s418_s5 }
  0x55   : > { %618 = dma.done.wait (%p893_p9), %s183_s17, 512  }
  0x56   : > { %620 = vsyncadd (%p893_p9), %s183_s17, 4294966784  ;;  %v646_v0 = vmov 0.0|0.0   ;;  %vm647_vm0 = vmmov 0   ;;  %v648_v1 = vmov 0.0   ;;  %v216_v2 = vld [vmem:[%s186_s19] sm:$0xff]  ;;  %v217_v3 = vld [vmem:[%s186_s19 + $0x8] sm:$0xff] }
  0x57   : > { %442 = vmatprep.subr.bf16.mxu0 %v646_v0  ;;  %439 = vmatprep.mubr.msk.f32.mxu0 %vm647_vm0, %v648_v1  ;;  %v218_v4 = vld [vmem:[%s186_s19 + $0x10] sm:$0xff]  ;;  %v443_v5 = vpack.c.bf16 %v217_v3, %v216_v2  ;;  %v219_v6 = vld [vmem:[%s186_s19 + $0x18] sm:$0xff]  ;;  %vm227_vm1 = vcmask 261120   ;;  %p212_p11 = scmp.lt.s32.totalorder %s691_s16, 1  ;;  %s419_s10 = sshll.u32 %s810_s28, 3 }
  0x58   : > { %v446_v7 = vpack.c.bf16 %v219_v6, %v218_v4  ;;  %v215_v8 = vld [vmem:[#allocation2] sm:$0xff]  ;;  %s423_s29 = sshll.u32 %s691_s16, 7  ;;  %s211_s20 = scalar_lea.vmem [#allocation7], %s419_s10 }
  0x59   : > { %444 = vmatpush3.bf16.msra.mxu0 %v443_v5  ;;  %s213_s23 = scalar_select %p212_p11, %s691_s16, 1 }
  0x5a   : > { %445 = vmatprep.subr.bf16.mxu0 %v646_v0  ;;  %s319_s30 = sshll.u32 %s211_s20, 4  ;;  %s828_s6 = scalar_lea.hbm %s875_s3, %s423_s29  ;;  %s830_s30 = int_to_ptr.vmem [resolvable:$true] %s319_s30 }
  0x5b   : > { %s214_s7 = scalar_lea.vmem %s874_s2, %s213_s23  ;;  %s306_s8 = scalar_lea.sflag [#allocation4], %s810_s28 }
  0x5c   : > { %v420_v9 = vld [vmem:[%s214_s7] ss:$0 sm:$0xff]  ;;  %s569_s9 = scalar_lea.vmem %s830_s30, 128  ;;  %p894_p2 = scmp.ne.s32.totalorder %s883_s24, 0 }
  0x5d   : > { %447 = vmatpush3.bf16.msra.mxu0 %v446_v7  ;;  %p570_p10 = scmp.ne.s32.totalorder %s830_s30, %s569_s9  ;;  %s649_s16 = smov [#allocation7]  }
  0x5e   : > { %s573_s11 = sshll.u32 %s649_s16, 4  ;;  %s574_s11 = int_to_ptr.vmem [resolvable:$false] %s573_s11 }
  0x5f   : > { %p571_p4 = pnand %p570_p10, %p894_p2  ;;  %s575_s5 = scalar_lea.vmem %s574_s11, 256 }
  0x60   : > { %440 = vmatmul.mubr.msk.f32.vlgmr.msra.gmra.mrb[0].mxu0 %vm227_vm1, %v215_v8  ;;  %p576_p0 = scmp.lt.s32.totalorder %s830_s30, %s574_s11  ;;  %p577_p6 = scmp.lt.s32.totalorder %s575_s5, %s569_s9 }
  0x61   : > { %p572_p5 = pneg %p571_p4 }
  0x62   : > { %p578_p13 = por %p577_p6, %p576_p0 }
  0x64   : > { %p579_p7 = pnand %p578_p13, %p572_p5 }
 0x133   : > { %v297_v10 = vpop.f32.mrb[0].mxu0 }
 0x134   : > { %v298_v11 = vadd.f32 %v420_v9, %v297_v10  ;;  %v441_v12 = vpop.f32.mrb[1].mxu0 }
 0x136   : > { %vm301_vm2 = vcmp.ge.f32.partialorder %v298_v11, 0.0  ;;  %v302_v13 = vmul.f32 0.01, %v298_v11 }
 0x138   : > { %v303_v14 = vsel %vm301_vm2, %v298_v11, %v302_v13 }
 0x139   : > { %304 = vst [vmem:[%s211_s20] sm:$0xff] %v303_v14 }
 0x13a   : > { %582 = shalt.err (!%p579_p7)
}
 0x13b   : > { %s583_s28 = scalar_lea.hbm %s828_s6, 128  ;;  %s587_s23 = scalar_lea.hbm %s875_s3, 256 }
 0x13c   : > { %p584_p3 = scmp.ne.s32.totalorder %s828_s6, %s583_s28  ;;  %p588_p8 = scmp.lt.u32.totalorder %s828_s6, %s875_s3 }
 0x13d   : > { %p589_p9 = scmp.lt.u32.totalorder %s587_s23, %s583_s28  ;;  %p591_p10 = scmp.lt.u32.totalorder %s583_s28, %s828_s6 }
 0x13e   : > { %p585_p12 = pnand %p584_p3, %p894_p2 }
 0x13f   : > { %p590_p11 = por %p589_p9, %p588_p8 }
 0x140   : > { %p586_p1 = pneg %p585_p12 }
 0x141   : > { %p592_p4 = por %p591_p10, %p590_p11 }
 0x143   : > { %p593_p5 = pnand %p592_p4, %p586_p1 }
 0x145   : > { %596 = shalt.err (!%p593_p5)
}
 0x146   : > { %454 = dma.vmem_to_hbm [thread:$0]  (%p894_p2), %s830_s30, 128, %s828_s6, %s306_s8  }
 0x147 PF: > { %s331_s7 = sand.u32 1, %s627_s12   ;;  %p895_p0 = scmp.ne.s32.totalorder %s884_s25, 0 }
 0x148   : > { %p896_p6 = scmp.ge.s32.totalorder %s639_s15, 2  ;;  %s332_s10 = scalar_lea.sflag [#allocation4], %s331_s7 }
 0x14a   : > { %p465_p13 = pnand %p896_p6, %p895_p0 }
 0x14c   : > { %622 = dma.done.wait (!%p465_p13), %s332_s10, 128  }
 0x14d   : > { %624 = vsyncadd (!%p465_p13), %s332_s10, 4294967168  ;;  %p17_p7 = scmp.ge.s32.totalorder %s695_s18, 4   ;;  %s897_s12 = smov %s631_s13 }
 0x14e   : > { %s898_s13 = smov %s635_s14  ;;  %s899_s14 = smov %s707_s21 }
 0x14f   : > { %s900_s15 = smov %s695_s18  ;;  %19 = sbr.rel (!%p17_p7) target bundleno = 6 (0x6), region = 85 }
 0x156   :  { %337 = vsyncpa [#allocation3], 1 }
 0x157   :  { %339 = vsyncpa [#allocation3 + $0x1], 1 }
 0x158   :  { %340 = vsyncpa [#allocation6], 1 }
 0x159   :  { %342 = vsyncpa [#allocation6 + $0x1], 1 }
 0x15a   :  { %343 = vsyncpa [#allocation4], 1 }
 0x15b   :  { %345 = vsyncpa [#allocation4 + $0x1], 1 }

</bundles_post_ra>
